<compile_context>
chip_gen: v7x
topology: tpu7x:2x2x1
jax: 0.10.0
libtpu: 0.0.40
codegen_flags: <defaults>
</compile_context>

<pallas_src>
import math

import jax
import jax.numpy as jnp
from jax.experimental import pallas as pl
from jax.experimental.pallas import tpu as pltpu

_BN_EPS = 1e-5
_MAX_FUSED_NP = 512          # fused path keeps the whole (padded) Cout in one lane block
_VMEM_LIMIT = 32 * 1024 * 1024


def _round_up(x, m):
    return ((x + m - 1) // m) * m


# ----------------------------------------------------------------------------
# Main kernel: fused 1x1 conv (matmul) + folded BN + ReLU6 + nearest 2x upsample
# ----------------------------------------------------------------------------
def _fused_conv_bn_relu6_up2x_kernel(x_ref, w_ref, s_ref, b_ref, o_ref, acc_ref):
    """Grid = (m, k).  acc (R*W, Np) accumulates x @ w over k; the last k step
    applies the folded-BN affine + ReLU6 and writes the 2x-upsampled block
    (R, 2, W, 2*Np): width duplicated along lanes, height via broadcast."""
    k = pl.program_id(1)

    @pl.when(k == 0)
    def _():
        acc_ref[...] = jnp.zeros_like(acc_ref)

    acc_ref[...] += jnp.dot(x_ref[...], w_ref[...],
                            preferred_element_type=jnp.float32)

    @pl.when(k == pl.num_programs(1) - 1)
    def _():
        rows, _, width, two_np = o_ref.shape            # (R, 2, W, 2*Np)
        y = acc_ref[...] * s_ref[...] + b_ref[...]      # (R*W, Np)
        y = jnp.minimum(jnp.maximum(y, 0.0), 6.0)       # ReLU6
        yy = jnp.concatenate([y, y], axis=-1)           # width x2 (lanes)
        yy = yy.reshape(rows, 1, width, two_np)
        o_ref[...] = jnp.broadcast_to(yy, o_ref.shape)  # height x2


def _fused_forward(x_nhwc, w, scale, shift):
    """Fused Conv1x1 + BN + ReLU6 + nearest-2x-upsample on NHWC.

    Requires W % 8 == 0 (sublane-aligned in-kernel reshape) and padded Cout
    <= _MAX_FUSED_NP (single lane block).  Returns (B, 2H, 2W, Cout) f32.
    """
    B, H, W, Cin = x_nhwc.shape
    Cout = w.shape[1]
    BH, K, N = B * H, Cin, Cout

    Np = _round_up(N, 128)
    tk = min(512, _round_up(K, 128))
    Kp = _round_up(K, tk)

    # Rows of (b, h) per M tile: keep the M tile around 128-256 pixels.
    target_rows = 256 if Np <= 256 else 128
    R = max(1, min(BH, max(1, target_rows // W)))
    BHp = _round_up(BH, R)
    Mp = BHp * W

    xm = jnp.pad(x_nhwc.reshape(BH * W, K),
                 ((0, Mp - BH * W), (0, Kp - K))).astype(jnp.bfloat16)
    wp = jnp.pad(w, ((0, Kp - K), (0, Np - N))).astype(jnp.bfloat16)
    sp = jnp.pad(scale, (0, Np - N)).reshape(1, Np).astype(jnp.float32)
    bp = jnp.pad(shift, (0, Np - N)).reshape(1, Np).astype(jnp.float32)

    grid = (BHp // R, Kp // tk)          # reduction (k) axis last

    out = pl.pallas_call(
        _fused_conv_bn_relu6_up2x_kernel,
        out_shape=jax.ShapeDtypeStruct((BHp, 2, W, 2 * Np), jnp.float32),
        grid=grid,
        in_specs=[
            pl.BlockSpec((R * W, tk), lambda m, k: (m, k)),
            pl.BlockSpec((tk, Np), lambda m, k: (k, 0)),
            pl.BlockSpec((1, Np), lambda m, k: (0, 0)),
            pl.BlockSpec((1, Np), lambda m, k: (0, 0)),
        ],
        out_specs=pl.BlockSpec((R, 2, W, 2 * Np), lambda m, k: (m, 0, 0, 0)),
        scratch_shapes=[pltpu.VMEM((R * W, Np), jnp.float32)],
        compiler_params=pltpu.CompilerParams(
            dimension_semantics=("parallel", "arbitrary"),
            vmem_limit_bytes=_VMEM_LIMIT),
    )(xm, wp, sp, bp)

    # (BHp, 2, W, 2*Np) -> slice padding -> (B, 2H, 2W, N); the reshapes are
    # free row-major reinterpretations.
    out = out[:BH].reshape(BH, 2, W, 2, Np)[..., :N]
    return out.reshape(B, 2 * H, 2 * W, N)


# ----------------------------------------------------------------------------
# Fallback kernel 1: fused 1x1 conv (matmul) + folded BN + ReLU6 (N-tiled)
# ----------------------------------------------------------------------------
def _mm_bn_relu6_kernel(x_ref, w_ref, s_ref, b_ref, o_ref):
    k = pl.program_id(2)

    @pl.when(k == 0)
    def _():
        o_ref[...] = jnp.zeros_like(o_ref)

    o_ref[...] += jnp.dot(x_ref[...], w_ref[...],
                          preferred_element_type=jnp.float32)

    @pl.when(k == pl.num_programs(2) - 1)
    def _():
        y = o_ref[...] * s_ref[...] + b_ref[...]
        o_ref[...] = jnp.minimum(jnp.maximum(y, 0.0), 6.0)


def conv1x1_bn_relu6(x_nhwc, w, scale, shift):
    """Fallback: Conv1x1 + BN(folded) + ReLU6 on NHWC (output tiled over N)."""
    B, H, W, Cin = x_nhwc.shape
    Cout = w.shape[1]
    M, K, N = B * H * W, Cin, Cout

    tm = min(256, _round_up(M, 8))
    tn = 128 if N <= 128 else 256
    tk = min(512, _round_up(K, 128))
    Mp, Kp, Np = _round_up(M, tm), _round_up(K, tk), _round_up(N, tn)

    xm = jnp.pad(x_nhwc.reshape(M, K),
                 ((0, Mp - M), (0, Kp - K))).astype(jnp.bfloat16)
    wp = jnp.pad(w, ((0, Kp - K), (0, Np - N))).astype(jnp.bfloat16)
    sp = jnp.pad(scale, (0, Np - N)).reshape(1, Np).astype(jnp.float32)
    bp = jnp.pad(shift, (0, Np - N)).reshape(1, Np).astype(jnp.float32)

    grid = (Mp // tm, Np // tn, Kp // tk)

    out = pl.pallas_call(
        _mm_bn_relu6_kernel,
        out_shape=jax.ShapeDtypeStruct((Mp, Np), jnp.float32),
        grid=grid,
        in_specs=[
            pl.BlockSpec((tm, tk), lambda m, n, k: (m, k)),
            pl.BlockSpec((tk, tn), lambda m, n, k: (k, n)),
            pl.BlockSpec((1, tn), lambda m, n, k: (0, n)),
            pl.BlockSpec((1, tn), lambda m, n, k: (0, n)),
        ],
        out_specs=pl.BlockSpec((tm, tn), lambda m, n, k: (m, n)),
        compiler_params=pltpu.CompilerParams(
            dimension_semantics=("parallel", "parallel", "arbitrary"),
            vmem_limit_bytes=_VMEM_LIMIT),
    )(xm, wp, sp, bp)

    return out[:M, :N].reshape(B, H, W, N)


# ----------------------------------------------------------------------------
# Fallback kernel 2: nearest-neighbor 2x upsample
# ----------------------------------------------------------------------------
def _upsample2x_kernel(x_ref, o_ref):
    # x_ref: (1, 1, 1, W, C)  ->  o_ref: (1, 1, 2, W, 2*C)
    x = x_ref[...]
    xx = jnp.concatenate([x, x], axis=-1)           # width doubling (lanes)
    o_ref[...] = jnp.broadcast_to(xx, o_ref.shape)  # height doubling


def upsample2x_nearest(x_nhwc):
    """Fallback NHWC nearest 2x upsample == nn.Upsample(scale_factor=2)."""
    B, H, W, C = x_nhwc.shape
    x5 = x_nhwc.reshape(B, H, 1, W, C)
    out = pl.pallas_call(
        _upsample2x_kernel,
        out_shape=jax.ShapeDtypeStruct((B, H, 2, W, 2 * C), x_nhwc.dtype),
        grid=(B, H),
        in_specs=[pl.BlockSpec((1, 1, 1, W, C),
                               lambda b, i: (b, i, 0, 0, 0))],
        out_specs=pl.BlockSpec((1, 1, 2, W, 2 * C),
                               lambda b, i: (b, i, 0, 0, 0)),
        compiler_params=pltpu.CompilerParams(
            dimension_semantics=("parallel", "parallel")),
    )(x5)
    return out.reshape(B, 2 * H, 2 * W, C)


# ----------------------------------------------------------------------------
# Upsamplep parameters + forward
# ----------------------------------------------------------------------------
def init_upsamplep(key, in_channels, out_channels):
    """Conv2d(in, out, 1, bias=False) weights + BatchNorm2d(out) params."""
    kw, kg, kb = jax.random.split(key, 3)
    w = (jax.random.normal(kw, (in_channels, out_channels), jnp.float32)
         / math.sqrt(in_channels))
    gamma = 1.0 + 0.05 * jax.random.normal(kg, (out_channels,), jnp.float32)
    beta = 0.05 * jax.random.normal(kb, (out_channels,), jnp.float32)
    # BN folded with running_mean=0, running_var=1 (state at __init__).
    scale = gamma / jnp.sqrt(1.0 + _BN_EPS)
    shift = beta
    return dict(w=w, scale=scale, shift=shift)


def upsamplep_forward(params, x_nchw):
    """Upsamplep.forward: conv2d(in,out,1)+BN+ReLU6 -> nearest 2x upsample."""
    x = jnp.transpose(x_nchw, (0, 2, 3, 1)).astype(jnp.float32)   # NCHW -> NHWC
    w, scale, shift = params["w"], params["scale"], params["shift"]
    W = x.shape[2]
    Np = _round_up(w.shape[1], 128)
    if (W % 8 == 0) and (Np <= _MAX_FUSED_NP):
        y = _fused_forward(x, w, scale, shift)          # single fused kernel
    else:
        y = conv1x1_bn_relu6(x, w, scale, shift)        # two-kernel fallback
        y = upsample2x_nearest(y)
    return jnp.transpose(y, (0, 3, 1, 2))               # NHWC -> NCHW


# ----------------------------------------------------------------------------
if __name__ == "__main__":
    B, Cin, Cout, H, W = 2, 64, 32, 16, 16

    key = jax.random.PRNGKey(0)
    kx, kp = jax.random.split(key)
    x = jax.random.normal(kx, (B, Cin, H, W), jnp.float32)
    params = init_upsamplep(kp, Cin, Cout)

    out = jax.jit(upsamplep_forward)(params, x)
    jax.block_until_ready(out)

    assert out.shape == (B, Cout, 2 * H, 2 * W), out.shape
    assert bool(jnp.all(jnp.isfinite(out)))

    # Pure-JAX reference (same bf16 rounding of the matmul operands).
    xh = jnp.transpose(x, (0, 2, 3, 1))
    xb = xh.astype(jnp.bfloat16).astype(jnp.float32)
    wb = params["w"].astype(jnp.bfloat16).astype(jnp.float32)
    ref = jnp.einsum("bhwc,cd->bhwd", xb, wb)
    ref = jnp.clip(ref * params["scale"] + params["shift"], 0.0, 6.0)
    ref = jnp.repeat(jnp.repeat(ref, 2, axis=1), 2, axis=2)
    ref = jnp.transpose(ref, (0, 3, 1, 2))
    max_err = float(jnp.max(jnp.abs(out - ref)))
    assert max_err < 1e-2, max_err

    print("KERNEL_OK")
</pallas_src>

<mosaic_0001>
module attributes {stable_mosaic.version = 11 : i64} {
  func.func @_fused_conv_bn_relu6_up2x_kernel(%arg0: i32, %arg1: i32, %arg2: memref<256x128xbf16, #tpu.memory_space<vmem>>, %arg3: memref<128x128xbf16, #tpu.memory_space<vmem>>, %arg4: memref<1x128xf32, #tpu.memory_space<vmem>>, %arg5: memref<1x128xf32, #tpu.memory_space<vmem>>, %arg6: memref<16x2x16x256xf32, #tpu.memory_space<vmem>>, %arg7: memref<256x128xf32, #tpu.memory_space<vmem>>) attributes {dimension_semantics = [#tpu.dimension_semantics<parallel>, #tpu.dimension_semantics<arbitrary>], iteration_bounds = array<i64: 2, 1>, scalar_prefetch = 0 : i64, scratch_operands = 1 : i64, tpu.core_type = #tpu.core_type<tc>, window_params = [{transform_indices = @transform_0, window_bounds = array<i64: 256, 128>}, {transform_indices = @transform_1, window_bounds = array<i64: 128, 128>}, {pipeline_mode = #tpu.pipeline_mode<synchronous>, transform_indices = @transform_2, window_bounds = array<i64: 1, 128>}, {pipeline_mode = #tpu.pipeline_mode<synchronous>, transform_indices = @transform_3, window_bounds = array<i64: 1, 128>}, {transform_indices = @transform_4, window_bounds = array<i64: 16, 2, 16, 256>}]} {
    %c0_i32 = arith.constant 0 : i32
    %0 = arith.cmpi eq, %arg1, %c0_i32 : i32
    %1 = arith.extui %0 : i1 to i32
    %c0_i32_0 = arith.constant 0 : i32
    %2 = arith.cmpi ne, %1, %c0_i32_0 : i32
    scf.if %2 {
      %cst_10 = arith.constant 0.000000e+00 : f32
      %12 = vector.broadcast %cst_10 : f32 to vector<256x128xf32>
      %c0_11 = arith.constant 0 : index
      %c0_12 = arith.constant 0 : index
      %13 = vector.load %arg7[%c0_11, %c0_12] : memref<256x128xf32, #tpu.memory_space<vmem>>, vector<256x128xf32>
      tpu.vector_store %arg7[%c0_11, %c0_12], %12 {strides = array<i32>} : memref<256x128xf32, #tpu.memory_space<vmem>>, vector<256x128xf32>,
    } else {
    }
    %c0 = arith.constant 0 : index
    %c0_1 = arith.constant 0 : index
    %3 = vector.load %arg7[%c0, %c0_1] : memref<256x128xf32, #tpu.memory_space<vmem>>, vector<256x128xf32>
    %c0_2 = arith.constant 0 : index
    %c0_3 = arith.constant 0 : index
    %4 = vector.load %arg2[%c0_2, %c0_3] : memref<256x128xbf16, #tpu.memory_space<vmem>>, vector<256x128xbf16>
    %c0_4 = arith.constant 0 : index
    %c0_5 = arith.constant 0 : index
    %5 = vector.load %arg3[%c0_4, %c0_5] : memref<128x128xbf16, #tpu.memory_space<vmem>>, vector<128x128xbf16>
    %cst = arith.constant dense<0.000000e+00> : vector<256x128xf32>
    %6 = tpu.matmul %4, %5, %cst {dimension_numbers = #tpu.dot_dimension_numbers<[1], [0], [0], [1], [0, 0, 1, 1], [], []>} : vector<256x128xbf16>, vector<128x128xbf16>, vector<256x128xf32> -> vector<256x128xf32>
    %7 = arith.addf %3, %6 : vector<256x128xf32>
    %c0_6 = arith.constant 0 : index
    %c0_7 = arith.constant 0 : index
    %8 = vector.load %arg7[%c0_6, %c0_7] : memref<256x128xf32, #tpu.memory_space<vmem>>, vector<256x128xf32>
    tpu.vector_store %arg7[%c0_6, %c0_7], %7 {strides = array<i32>} : memref<256x128xf32, #tpu.memory_space<vmem>>, vector<256x128xf32>,
    %c0_i32_8 = arith.constant 0 : i32
    %9 = arith.cmpi eq, %arg1, %c0_i32_8 : i32
    %10 = arith.extui %9 : i1 to i32
    %c0_i32_9 = arith.constant 0 : i32
    %11 = arith.cmpi ne, %10, %c0_i32_9 : i32
    scf.if %11 {
      %c0_10 = arith.constant 0 : index
      %c0_11 = arith.constant 0 : index
      %12 = vector.load %arg7[%c0_10, %c0_11] : memref<256x128xf32, #tpu.memory_space<vmem>>, vector<256x128xf32>
      %c0_12 = arith.constant 0 : index
      %c0_13 = arith.constant 0 : index
      %13 = vector.load %arg4[%c0_12, %c0_13] : memref<1x128xf32, #tpu.memory_space<vmem>>, vector<1x128xf32>
      %14 = vector.broadcast %13 : vector<1x128xf32> to vector<256x128xf32>
      %15 = arith.mulf %12, %14 : vector<256x128xf32>
      %c0_14 = arith.constant 0 : index
      %c0_15 = arith.constant 0 : index
      %16 = vector.load %arg5[%c0_14, %c0_15] : memref<1x128xf32, #tpu.memory_space<vmem>>, vector<1x128xf32>
      %17 = vector.broadcast %16 : vector<1x128xf32> to vector<256x128xf32>
      %18 = arith.addf %15, %17 : vector<256x128xf32>
      %cst_16 = arith.constant 0.000000e+00 : f32
      %19 = vector.broadcast %cst_16 : f32 to vector<256x128xf32>
      %20 = arith.maximumf %18, %19 : vector<256x128xf32>
      %cst_17 = arith.constant 6.000000e+00 : f32
      %21 = vector.broadcast %cst_17 : f32 to vector<256x128xf32>
      %22 = arith.minimumf %20, %21 : vector<256x128xf32>
      %23 = tpu.concatenate %22, %22 in 1 : vector<256x128xf32>, vector<256x128xf32> -> vector<256x256xf32>
      %24 = vector.shape_cast %23 : vector<256x256xf32> to vector<16x1x16x256xf32>
      %25 = vector.shape_cast %24 : vector<16x1x16x256xf32> to vector<16x1x16x256xf32>
      %26 = vector.broadcast %25 : vector<16x1x16x256xf32> to vector<16x2x16x256xf32>
      %c0_18 = arith.constant 0 : index
      %c0_19 = arith.constant 0 : index
      %c0_20 = arith.constant 0 : index
      %c0_21 = arith.constant 0 : index
      %27 = vector.load %arg6[%c0_18, %c0_19, %c0_20, %c0_21] : memref<16x2x16x256xf32, #tpu.memory_space<vmem>>, vector<16x2x16x256xf32>
      tpu.vector_store %arg6[%c0_18, %c0_19, %c0_20, %c0_21], %26 {strides = array<i32>} : memref<16x2x16x256xf32, #tpu.memory_space<vmem>>, vector<16x2x16x256xf32>,
    } else {
    }
    return
  }
  func.func @transform_0(%arg0: i32, %arg1: i32) -> (i32, i32) {
    %c0_i32 = arith.constant 0 : i32
    return %arg0, %arg1 : i32, i32
  }
  func.func @transform_1(%arg0: i32, %arg1: i32) -> (i32, i32) {
    %c0_i32 = arith.constant 0 : i32
    %c0_i32_0 = arith.constant 0 : i32
    return %arg1, %c0_i32 : i32, i32
  }
  func.func @transform_2(%arg0: i32, %arg1: i32) -> (i32, i32) {
    %c0_i32 = arith.constant 0 : i32
    %c0_i32_0 = arith.constant 0 : i32
    %c0_i32_1 = arith.constant 0 : i32
    return %c0_i32, %c0_i32_0 : i32, i32
  }
  func.func @transform_3(%arg0: i32, %arg1: i32) -> (i32, i32) {
    %c0_i32 = arith.constant 0 : i32
    %c0_i32_0 = arith.constant 0 : i32
    %c0_i32_1 = arith.constant 0 : i32
    return %c0_i32, %c0_i32_0 : i32, i32
  }
  func.func @transform_4(%arg0: i32, %arg1: i32) -> (i32, i32, i32, i32) {
    %c0_i32 = arith.constant 0 : i32
    %c0_i32_0 = arith.constant 0 : i32
    %c0_i32_1 = arith.constant 0 : i32
    %c0_i32_2 = arith.constant 0 : i32
    return %arg0, %c0_i32, %c0_i32_0, %c0_i32_1 : i32, i32, i32, i32
  }
}

</mosaic_0001>

<bundles_post_ra>
// kernel: upsamplep_forward.1
= control target key start
LH: loop header
LB: loop body
LE: loop exit
PB: predicated region body
PF: predicated region fallthrough
CT: control target
= control target key end

     0   :  { %s1349_s15 = smov 0   ;;  %s1351_s16 = smov 0   ;;  %s1632_s0 = inlined_call_operand.vmem [shape: bf16[512,128], index: 0, kind: input, shape index: {}]   ;;  %s1633_s1 = inlined_call_operand.vmem [shape: bf16[128,128], index: 1, kind: input, shape index: {}]   ;;  %s1634_s2 = inlined_call_operand.vmem [shape: f32[1,128], index: 2, kind: input, shape index: {}]   ;;  %s1635_s3 = inlined_call_operand.vmem [shape: f32[1,128], index: 3, kind: input, shape index: {}]   ;;  %s1636_s4 = inlined_call_operand.vmem [shape: f32[32,2,16,256], index: 4, kind: output, shape index: {}]  }
   0x1   :  { %s1353_s17 = smov 0  }
   0x2 LB: > { %s26_s18 = sadd.s32 1, %s1318_s16  ;;  %p1129_p0 = scmp.ge.s32.totalorder %s1322_s17, 1  ;;  %s1322_s17 = sphi %s1353_s17, %s14_s17   ;;  %s1318_s16 = sphi %s1351_s16, %s1638_s16   ;;  %s1314_s15 = sphi %s1349_s15, %s1637_s15  }
   0x3   : > { %p28_p1 = scmp.ge.s32.totalorder %s26_s18, 2  ;;  %p191_p2 = scmp.lt.s32.totalorder %s1322_s17, 3 }
   0x5   : > { %s1640_s18 = smov (%p28_p1, %s26_s18), 0  ;;  %p192_p3 = pnand %p1129_p0, %p191_p2 }
   0x6   : > { %v1276_v0 = vld [vmem:[%s1633_s1] sm:$0xff] (!%p192_p3)   ;;  %s1130_s21 = sshll.u32 (!%p192_p3), %s1314_s15, 5  ;;  %v1277_v1 = vld [vmem:[%s1633_s1 + $0x8] sm:$0xff] (!%p192_p3)   ;;  %v1278_v2 = vld [vmem:[%s1633_s1 + $0x10] sm:$0xff] (!%p192_p3)   ;;  %s1132_s14 = sshll.u32 (!%p192_p3), %s1314_s15, 4 }
   0x7   : > { %195 = sbr.rel (%p192_p3) target bundleno = 323 (0x143), region = 36  ;;  %p227_p4 = scmp.lt.s32.totalorder (!%p192_p3), %s1130_s21, 63  ;;  %1188 = vmatprep.subr.bf16.mxu0 (!%p192_p3), %v1276_v0  ;;  %1236 = vmatprep.subr.bf16.mxu1 (!%p192_p3), %v1276_v0  ;;  %v1279_v3 = vld [vmem:[%s1633_s1 + $0x18] sm:$0xff] (!%p192_p3)   ;;  %v1280_v6 = vld [vmem:[%s1633_s1 + $0x20] sm:$0xff] (!%p192_p3)   ;;  %v1281_v7 = vld [vmem:[%s1633_s1 + $0x28] sm:$0xff] (!%p192_p3)  }
   0x8   : > { %1189 = vmatpush3.bf16.msra.mxu0 (!%p192_p3), %v1276_v0  ;;  %1244 = vmatpush3.bf16.msra.mxu1 (!%p192_p3), %v1276_v0  ;;  %v1282_v8 = vld [vmem:[%s1633_s1 + $0x30] sm:$0xff] (!%p192_p3)   ;;  %v1283_v9 = vld [vmem:[%s1633_s1 + $0x38] sm:$0xff] (!%p192_p3)   ;;  %p242_p5 = scmp.lt.s32.totalorder (!%p192_p3), %s1132_s14, 31  ;;  %v1419_v24 = vld [vmem:[%s1634_s2] ss:$0 sm:$0xff] (!%p192_p3) }
   0x9   : > { %1190 = vmatprep.subr.bf16.mxu0 (!%p192_p3), %v1277_v1  ;;  %1237 = vmatprep.subr.bf16.mxu1 (!%p192_p3), %v1277_v1  ;;  %v1424_v26 = vld [vmem:[%s1635_s3] ss:$0 sm:$0xff] (!%p192_p3) }
   0xc   : > { %1191 = vmatpush3.bf16.msra.mxu0 (!%p192_p3), %v1277_v1  ;;  %1245 = vmatpush3.bf16.msra.mxu1 (!%p192_p3), %v1277_v1 }
   0xd   : > { %1192 = vmatprep.subr.bf16.mxu0 (!%p192_p3), %v1278_v2  ;;  %1238 = vmatprep.subr.bf16.mxu1 (!%p192_p3), %v1278_v2 }
   0xe   : > { %s1642_s21 = smov (!%p227_p4, %s1130_s21), 63  ;;  %s1644_s14 = smov (!%p242_p5, %s1132_s14), 31 }
   0xf   : > { %s1131_s26 = sshll.u32 %s1642_s21, 2  ;;  %s1163_s15 = sshll.u32 %s1644_s14, 6 }
  0x10   : > { %s1382_s29 = scalar_lea.vmem %s1632_s0, %s1131_s26  ;;  %1193 = vmatpush3.bf16.msra.mxu0 %v1278_v2  ;;  %1246 = vmatpush3.bf16.msra.mxu1 %v1278_v2  ;;  %s1443_s25 = scalar_lea.vmem %s1636_s4, %s1163_s15 }
  0x11   : > { %v1284_v4 = vld [vmem:[%s1382_s29] sm:$0xff]   ;;  %1194 = vmatprep.subr.bf16.mxu0 %v1279_v3  ;;  %1239 = vmatprep.subr.bf16.mxu1 %v1279_v3  ;;  %v1286_v10 = vld [vmem:[%s1382_s29 + $0x8] sm:$0xff]   ;;  %v1288_v12 = vld [vmem:[%s1382_s29 + $0x10] sm:$0xff]  }
  0x12   : > { %v1285_v5 = vld [vmem:[%s1382_s29 + $0x40] sm:$0xff]   ;;  %1204 = vmatprep.mubr.bf16.mxu0 %v1284_v4  ;;  %v1287_v11 = vld [vmem:[%s1382_s29 + $0x48] sm:$0xff]   ;;  %v1289_v13 = vld [vmem:[%s1382_s29 + $0x50] sm:$0xff]  }
  0x13   : > { %1220 = vmatprep.mubr.bf16.mxu1 %v1285_v5  ;;  %v1290_v14 = vld [vmem:[%s1382_s29 + $0x18] sm:$0xff]   ;;  %v1292_v16 = vld [vmem:[%s1382_s29 + $0x20] sm:$0xff]   ;;  %v1294_v18 = vld [vmem:[%s1382_s29 + $0x28] sm:$0xff]  }
  0x14   : > { %1195 = vmatpush3.bf16.msra.mxu0 %v1279_v3  ;;  %1247 = vmatpush3.bf16.msra.mxu1 %v1279_v3  ;;  %v1291_v15 = vld [vmem:[%s1382_s29 + $0x58] sm:$0xff]   ;;  %v1293_v17 = vld [vmem:[%s1382_s29 + $0x60] sm:$0xff]   ;;  %v1295_v19 = vld [vmem:[%s1382_s29 + $0x68] sm:$0xff]  }
  0x15   : > { %1196 = vmatprep.subr.bf16.mxu0 %v1280_v6  ;;  %1240 = vmatprep.subr.bf16.mxu1 %v1280_v6  ;;  %v1296_v20 = vld [vmem:[%s1382_s29 + $0x30] sm:$0xff]   ;;  %v1298_v22 = vld [vmem:[%s1382_s29 + $0x38] sm:$0xff]  }
  0x16   : > { %v1297_v21 = vld [vmem:[%s1382_s29 + $0x70] sm:$0xff]   ;;  %v1299_v23 = vld [vmem:[%s1382_s29 + $0x78] sm:$0xff]  }
  0x18   : > { %1197 = vmatpush3.bf16.msra.mxu0 %v1280_v6  ;;  %1248 = vmatpush3.bf16.msra.mxu1 %v1280_v6 }
  0x19   : > { %1198 = vmatprep.subr.bf16.mxu0 %v1281_v7  ;;  %1241 = vmatprep.subr.bf16.mxu1 %v1281_v7 }
  0x1c   : > { %1199 = vmatpush3.bf16.msra.mxu0 %v1281_v7  ;;  %1249 = vmatpush3.bf16.msra.mxu1 %v1281_v7 }
  0x1d   : > { %1200 = vmatprep.subr.bf16.mxu0 %v1282_v8  ;;  %1242 = vmatprep.subr.bf16.mxu1 %v1282_v8 }
  0x20   : > { %1201 = vmatpush3.bf16.msra.mxu0 %v1282_v8  ;;  %1250 = vmatpush3.bf16.msra.mxu1 %v1282_v8 }
  0x21   : > { %1202 = vmatprep.subr.bf16.mxu0 %v1283_v9  ;;  %1243 = vmatprep.subr.bf16.mxu1 %v1283_v9 }
  0x24   : > { %1203 = vmatpush3.bf16.msra.mxu0 %v1283_v9  ;;  %1251 = vmatpush3.bf16.msra.mxu1 %v1283_v9 }
  0x27   : > { %1205 = vmatmul.mubr.bf16.vlgmr.msra.gmra.mrb[0].mxu0 %v1286_v10  ;;  %1221 = vmatmul.mubr.bf16.vlgmr.msra.gmra.mrb[0].mxu1 %v1287_v11 }
  0x28   : > { %1208 = vmatprep.mubr.bf16.mxu0 %v1288_v12  ;;  %1224 = vmatprep.mubr.bf16.mxu1 %v1289_v13 }
  0x2f   : > { %1209 = vmatmul.mubr.bf16.gmra.mrb[4].mxu0 %v1290_v14  ;;  %1225 = vmatmul.mubr.bf16.gmra.mrb[4].mxu1 %v1291_v15 }
  0x30   : > { %1212 = vmatprep.mubr.bf16.mxu0 %v1292_v16  ;;  %1228 = vmatprep.mubr.bf16.mxu1 %v1293_v17 }
  0x37   : > { %1213 = vmatmul.mubr.bf16.gmra.mrb[8].mxu0 %v1294_v18  ;;  %1229 = vmatmul.mubr.bf16.gmra.mrb[8].mxu1 %v1295_v19 }
  0x38   : > { %1216 = vmatprep.mubr.bf16.mxu0 %v1296_v20  ;;  %1232 = vmatprep.mubr.bf16.mxu1 %v1297_v21 }
  0x3f   : > { %1217 = vmatmul.mubr.bf16.gmra.mrb[12].mxu0 %v1298_v22  ;;  %1233 = vmatmul.mubr.bf16.gmra.mrb[12].mxu1 %v1299_v23 }
  0xfa   : > { %v1206_v25 = vpop.f32.mrb[0].mxu0  ;;  %v1222_v27 = vpop.f32.mrb[0].mxu1 }
  0xfb   : > { %v778_v28 = vmul.f32 %v1206_v25, %v1419_v24  ;;  %v794_v29 = vmul.f32 %v1222_v27, %v1419_v24  ;;  %v543_v30 = vpop.f32.mrb[1].mxu0  ;;  %v607_v31 = vpop.f32.mrb[1].mxu1 }
  0xfc   : > { %v776_v32 = vmul.f32 %v1419_v24, %v543_v30  ;;  %v792_v33 = vmul.f32 %v1419_v24, %v607_v31  ;;  %v1207_v34 = vpop.f32.mrb[2].mxu0  ;;  %v1223_v35 = vpop.f32.mrb[2].mxu1 }
  0xfd   : > { %v817_v36 = vadd.f32 %v1424_v26, %v778_v28  ;;  %v833_v37 = vadd.f32 %v1424_v26, %v794_v29  ;;  %v779_v38 = vmul.f32 %v1207_v34, %v1419_v24  ;;  %v795_v39 = vmul.f32 %v1223_v35, %v1419_v24  ;;  %v546_v40 = vpop.f32.mrb[3].mxu0  ;;  %v610_v41 = vpop.f32.mrb[3].mxu1 }
  0xfe   : > { %v815_v42 = vadd.f32 %v1424_v26, %v776_v32  ;;  %v831_v43 = vadd.f32 %v1424_v26, %v792_v33  ;;  %v777_v44 = vmul.f32 %v1419_v24, %v546_v40  ;;  %v793_v45 = vmul.f32 %v1419_v24, %v610_v41 }
  0xff   : > { %v849_v46 = vmax.f32 %v817_v36, 0.0  ;;  %v865_v47 = vmax.f32 %v833_v37, 0.0  ;;  %v818_v48 = vadd.f32 %v1424_v26, %v779_v38  ;;  %v834_v49 = vadd.f32 %v1424_v26, %v795_v39 }
 0x100   : > { %v847_v50 = vmax.f32 %v815_v42, 0.0  ;;  %v863_v51 = vmax.f32 %v831_v43, 0.0  ;;  %v816_v52 = vadd.f32 %v1424_v26, %v777_v44  ;;  %v832_v53 = vadd.f32 %v1424_v26, %v793_v45 }
 0x101   : > { %v881_v54 = vmin.f32 %v849_v46, 6.0  ;;  %v897_v55 = vmin.f32 %v865_v47, 6.0  ;;  %v850_v56 = vmax.f32 %v818_v48, 0.0  ;;  %v866_v57 = vmax.f32 %v834_v49, 0.0 }
 0x102   : > { %v879_v58 = vmin.f32 %v847_v50, 6.0  ;;  %v895_v59 = vmin.f32 %v863_v51, 6.0  ;;  %v848_v60 = vmax.f32 %v816_v52, 0.0  ;;  %v864_v61 = vmax.f32 %v832_v53, 0.0  ;;  %v1210_v62 = vpop.f32.mrb[4].mxu0  ;;  %v1226_v63 = vpop.f32.mrb[4].mxu1 }
 0x103   : > { %919 = vst [vmem:[%s1443_s25 + $0x40] sm:$0xff] %v881_v54  ;;  %920 = vst [vmem:[%s1443_s25 + $0x48] sm:$0xff] %v881_v54  ;;  %v882_v0 = vmin.f32 %v850_v56, 6.0  ;;  %v898_v1 = vmin.f32 %v866_v57, 6.0  ;;  %v782_v2 = vmul.f32 %v1210_v62, %v1419_v24  ;;  %v798_v3 = vmul.f32 %v1226_v63, %v1419_v24  ;;  %v559_v4 = vpop.f32.mrb[5].mxu0  ;;  %v623_v5 = vpop.f32.mrb[5].mxu1 }
 0x104   : > { %923 = vst [vmem:[%s1443_s25 + $0x60] sm:$0xff] %v881_v54  ;;  %924 = vst [vmem:[%s1443_s25 + $0x68] sm:$0xff] %v881_v54  ;;  %v880_v6 = vmin.f32 %v848_v60, 6.0  ;;  %v896_v7 = vmin.f32 %v864_v61, 6.0  ;;  %v780_v8 = vmul.f32 %v1419_v24, %v559_v4  ;;  %v796_v9 = vmul.f32 %v1419_v24, %v623_v5  ;;  %v1211_v10 = vpop.f32.mrb[6].mxu0  ;;  %v1227_v11 = vpop.f32.mrb[6].mxu1 }
 0x105   : > { %983 = vst [vmem:[%s1443_s25 + $0x240] sm:$0xff] %v897_v55  ;;  %984 = vst [vmem:[%s1443_s25 + $0x248] sm:$0xff] %v897_v55  ;;  %v821_v12 = vadd.f32 %v1424_v26, %v782_v2  ;;  %v837_v13 = vadd.f32 %v1424_v26, %v798_v3  ;;  %v783_v14 = vmul.f32 %v1211_v10, %v1419_v24  ;;  %v562_v16 = vpop.f32.mrb[7].mxu0  ;;  %v626_v17 = vpop.f32.mrb[7].mxu1 }
 0x106   : > { %987 = vst [vmem:[%s1443_s25 + $0x260] sm:$0xff] %v897_v55  ;;  %988 = vst [vmem:[%s1443_s25 + $0x268] sm:$0xff] %v897_v55  ;;  %v799_v15 = vmul.f32 %v1227_v11, %v1419_v24  ;;  %v819_v18 = vadd.f32 %v1424_v26, %v780_v8  ;;  %v835_v19 = vadd.f32 %v1424_v26, %v796_v9 }
 0x107   : > { %911 = vst [vmem:[%s1443_s25] sm:$0xff] %v879_v58  ;;  %912 = vst [vmem:[%s1443_s25 + $0x8] sm:$0xff] %v879_v58  ;;  %v781_v20 = vmul.f32 %v1419_v24, %v562_v16  ;;  %v797_v21 = vmul.f32 %v1419_v24, %v626_v17  ;;  %v853_v22 = vmax.f32 %v821_v12, 0.0  ;;  %v869_v23 = vmax.f32 %v837_v13, 0.0 }
 0x108   : > { %915 = vst [vmem:[%s1443_s25 + $0x20] sm:$0xff] %v879_v58  ;;  %916 = vst [vmem:[%s1443_s25 + $0x28] sm:$0xff] %v879_v58  ;;  %v822_v25 = vadd.f32 %v1424_v26, %v783_v14  ;;  %v838_v27 = vadd.f32 %v1424_v26, %v799_v15  ;;  %v851_v28 = vmax.f32 %v819_v18, 0.0  ;;  %v867_v29 = vmax.f32 %v835_v19, 0.0 }
 0x109   : > { %975 = vst [vmem:[%s1443_s25 + $0x200] sm:$0xff] %v895_v59  ;;  %976 = vst [vmem:[%s1443_s25 + $0x208] sm:$0xff] %v895_v59  ;;  %v820_v30 = vadd.f32 %v1424_v26, %v781_v20  ;;  %v836_v31 = vadd.f32 %v1424_v26, %v797_v21  ;;  %v885_v32 = vmin.f32 %v853_v22, 6.0  ;;  %v901_v33 = vmin.f32 %v869_v23, 6.0 }
 0x10a   : > { %979 = vst [vmem:[%s1443_s25 + $0x220] sm:$0xff] %v895_v59  ;;  %980 = vst [vmem:[%s1443_s25 + $0x228] sm:$0xff] %v895_v59  ;;  %v854_v34 = vmax.f32 %v822_v25, 0.0  ;;  %v870_v35 = vmax.f32 %v838_v27, 0.0  ;;  %v883_v36 = vmin.f32 %v851_v28, 6.0  ;;  %v899_v37 = vmin.f32 %v867_v29, 6.0 }
 0x10b   : > { %921 = vst [vmem:[%s1443_s25 + $0x50] sm:$0xff] %v882_v0  ;;  %922 = vst [vmem:[%s1443_s25 + $0x58] sm:$0xff] %v882_v0  ;;  %v852_v38 = vmax.f32 %v820_v30, 0.0  ;;  %v868_v39 = vmax.f32 %v836_v31, 0.0  ;;  %v1214_v40 = vpop.f32.mrb[8].mxu0  ;;  %v1230_v41 = vpop.f32.mrb[8].mxu1 }
 0x10c   : > { %925 = vst [vmem:[%s1443_s25 + $0x70] sm:$0xff] %v882_v0  ;;  %926 = vst [vmem:[%s1443_s25 + $0x78] sm:$0xff] %v882_v0  ;;  %v886_v42 = vmin.f32 %v854_v34, 6.0  ;;  %v902_v43 = vmin.f32 %v870_v35, 6.0  ;;  %v786_v44 = vmul.f32 %v1214_v40, %v1419_v24  ;;  %v802_v45 = vmul.f32 %v1230_v41, %v1419_v24  ;;  %v575_v46 = vpop.f32.mrb[9].mxu0  ;;  %v639_v47 = vpop.f32.mrb[9].mxu1 }
 0x10d   : > { %985 = vst [vmem:[%s1443_s25 + $0x250] sm:$0xff] %v898_v1  ;;  %986 = vst [vmem:[%s1443_s25 + $0x258] sm:$0xff] %v898_v1  ;;  %v884_v48 = vmin.f32 %v852_v38, 6.0  ;;  %v900_v49 = vmin.f32 %v868_v39, 6.0  ;;  %v784_v50 = vmul.f32 %v1419_v24, %v575_v46  ;;  %v800_v51 = vmul.f32 %v1419_v24, %v639_v47  ;;  %v1215_v52 = vpop.f32.mrb[10].mxu0  ;;  %v1231_v53 = vpop.f32.mrb[10].mxu1 }
 0x10e   : > { %989 = vst [vmem:[%s1443_s25 + $0x270] sm:$0xff] %v898_v1  ;;  %990 = vst [vmem:[%s1443_s25 + $0x278] sm:$0xff] %v898_v1  ;;  %v825_v54 = vadd.f32 %v1424_v26, %v786_v44  ;;  %v841_v55 = vadd.f32 %v1424_v26, %v802_v45  ;;  %v787_v56 = vmul.f32 %v1215_v52, %v1419_v24  ;;  %v578_v58 = vpop.f32.mrb[11].mxu0  ;;  %v642_v59 = vpop.f32.mrb[11].mxu1 }
 0x10f   : > { %913 = vst [vmem:[%s1443_s25 + $0x10] sm:$0xff] %v880_v6  ;;  %914 = vst [vmem:[%s1443_s25 + $0x18] sm:$0xff] %v880_v6  ;;  %v803_v57 = vmul.f32 %v1231_v53, %v1419_v24  ;;  %v823_v60 = vadd.f32 %v1424_v26, %v784_v50  ;;  %v839_v61 = vadd.f32 %v1424_v26, %v800_v51 }
 0x110   : > { %917 = vst [vmem:[%s1443_s25 + $0x30] sm:$0xff] %v880_v6  ;;  %918 = vst [vmem:[%s1443_s25 + $0x38] sm:$0xff] %v880_v6  ;;  %v785_v62 = vmul.f32 %v1419_v24, %v578_v58  ;;  %v801_v63 = vmul.f32 %v1419_v24, %v642_v59  ;;  %v857_v0 = vmax.f32 %v825_v54, 0.0  ;;  %v873_v1 = vmax.f32 %v841_v55, 0.0 }
 0x111   : > { %977 = vst [vmem:[%s1443_s25 + $0x210] sm:$0xff] %v896_v7  ;;  %978 = vst [vmem:[%s1443_s25 + $0x218] sm:$0xff] %v896_v7  ;;  %v826_v2 = vadd.f32 %v1424_v26, %v787_v56  ;;  %v842_v3 = vadd.f32 %v1424_v26, %v803_v57  ;;  %v855_v4 = vmax.f32 %v823_v60, 0.0  ;;  %v871_v5 = vmax.f32 %v839_v61, 0.0 }
 0x112   : > { %981 = vst [vmem:[%s1443_s25 + $0x230] sm:$0xff] %v896_v7  ;;  %982 = vst [vmem:[%s1443_s25 + $0x238] sm:$0xff] %v896_v7  ;;  %v824_v6 = vadd.f32 %v1424_v26, %v785_v62  ;;  %v840_v7 = vadd.f32 %v1424_v26, %v801_v63  ;;  %v889_v8 = vmin.f32 %v857_v0, 6.0  ;;  %v905_v9 = vmin.f32 %v873_v1, 6.0  ;;  %v1218_v16 = vpop.f32.mrb[12].mxu0  ;;  %v1234_v17 = vpop.f32.mrb[12].mxu1 }
 0x113   : > { %935 = vst [vmem:[%s1443_s25 + $0xc0] sm:$0xff] %v885_v32  ;;  %936 = vst [vmem:[%s1443_s25 + $0xc8] sm:$0xff] %v885_v32  ;;  %v858_v10 = vmax.f32 %v826_v2, 0.0  ;;  %v874_v11 = vmax.f32 %v842_v3, 0.0  ;;  %v887_v12 = vmin.f32 %v855_v4, 6.0  ;;  %v903_v13 = vmin.f32 %v871_v5, 6.0 }
 0x114   : > { %939 = vst [vmem:[%s1443_s25 + $0xe0] sm:$0xff] %v885_v32  ;;  %940 = vst [vmem:[%s1443_s25 + $0xe8] sm:$0xff] %v885_v32  ;;  %v856_v14 = vmax.f32 %v824_v6, 0.0  ;;  %v872_v15 = vmax.f32 %v840_v7, 0.0  ;;  %v790_v20 = vmul.f32 %v1218_v16, %v1419_v24  ;;  %v806_v21 = vmul.f32 %v1234_v17, %v1419_v24  ;;  %v591_v22 = vpop.f32.mrb[13].mxu0  ;;  %v655_v23 = vpop.f32.mrb[13].mxu1 }
 0x115   : > { %999 = vst [vmem:[%s1443_s25 + $0x2c0] sm:$0xff] %v901_v33  ;;  %1000 = vst [vmem:[%s1443_s25 + $0x2c8] sm:$0xff] %v901_v33  ;;  %v890_v18 = vmin.f32 %v858_v10, 6.0  ;;  %v906_v19 = vmin.f32 %v874_v11, 6.0  ;;  %v788_v28 = vmul.f32 %v1419_v24, %v591_v22  ;;  %v804_v29 = vmul.f32 %v1419_v24, %v655_v23  ;;  %v1219_v30 = vpop.f32.mrb[14].mxu0  ;;  %v1235_v31 = vpop.f32.mrb[14].mxu1 }
 0x116   : > { %1003 = vst [vmem:[%s1443_s25 + $0x2e0] sm:$0xff] %v901_v33  ;;  %1004 = vst [vmem:[%s1443_s25 + $0x2e8] sm:$0xff] %v901_v33  ;;  %v888_v25 = vmin.f32 %v856_v14, 6.0  ;;  %v904_v27 = vmin.f32 %v872_v15, 6.0  ;;  %v829_v32 = vadd.f32 %v1424_v26, %v790_v20  ;;  %v845_v33 = vadd.f32 %v1424_v26, %v806_v21 }
 0x117   : > { %927 = vst [vmem:[%s1443_s25 + $0x80] sm:$0xff] %v883_v36  ;;  %928 = vst [vmem:[%s1443_s25 + $0x88] sm:$0xff] %v883_v36  ;;  %v791_v34 = vmul.f32 %v1219_v30, %v1419_v24  ;;  %v807_v35 = vmul.f32 %v1235_v31, %v1419_v24  ;;  %v827_v38 = vadd.f32 %v1424_v26, %v788_v28 }
 0x118   : > { %931 = vst [vmem:[%s1443_s25 + $0xa0] sm:$0xff] %v883_v36  ;;  %932 = vst [vmem:[%s1443_s25 + $0xa8] sm:$0xff] %v883_v36  ;;  %v594_v36 = vpop.f32.mrb[15].mxu0  ;;  %v843_v39 = vadd.f32 %v1424_v26, %v804_v29 }
 0x119   : > { %991 = vst [vmem:[%s1443_s25 + $0x280] sm:$0xff] %v899_v37  ;;  %992 = vst [vmem:[%s1443_s25 + $0x288] sm:$0xff] %v899_v37  ;;  %v789_v40 = vmul.f32 %v1419_v24, %v594_v36  ;;  %v830_v44 = vadd.f32 %v1424_v26, %v791_v34  ;;  %v846_v45 = vadd.f32 %v1424_v26, %v807_v35  ;;  %v859_v46 = vmax.f32 %v827_v38, 0.0 }
 0x11a   : > { %995 = vst [vmem:[%s1443_s25 + $0x2a0] sm:$0xff] %v899_v37  ;;  %996 = vst [vmem:[%s1443_s25 + $0x2a8] sm:$0xff] %v899_v37  ;;  %v658_v37 = vpop.f32.mrb[15].mxu1  ;;  %v875_v47 = vmax.f32 %v843_v39, 0.0 }
 0x11b   : > { %937 = vst [vmem:[%s1443_s25 + $0xd0] sm:$0xff] %v886_v42  ;;  %938 = vst [vmem:[%s1443_s25 + $0xd8] sm:$0xff] %v886_v42  ;;  %v805_v41 = vmul.f32 %v1419_v24, %v658_v37  ;;  %v862_v51 = vmax.f32 %v830_v44, 0.0  ;;  %v878_v52 = vmax.f32 %v846_v45, 0.0  ;;  %v891_v53 = vmin.f32 %v859_v46, 6.0 }
 0x11c   : > { %941 = vst [vmem:[%s1443_s25 + $0xf0] sm:$0xff] %v886_v42  ;;  %942 = vst [vmem:[%s1443_s25 + $0xf8] sm:$0xff] %v886_v42  ;;  %v861_v42 = vmax.f32 %v829_v32, 0.0  ;;  %v907_v54 = vmin.f32 %v875_v47, 6.0 }
 0x11d   : > { %1001 = vst [vmem:[%s1443_s25 + $0x2d0] sm:$0xff] %v902_v43  ;;  %1002 = vst [vmem:[%s1443_s25 + $0x2d8] sm:$0xff] %v902_v43  ;;  %v910_v57 = vmin.f32 %v878_v52, 6.0 }
 0x11e   : > { %1005 = vst [vmem:[%s1443_s25 + $0x2f0] sm:$0xff] %v902_v43  ;;  %1006 = vst [vmem:[%s1443_s25 + $0x2f8] sm:$0xff] %v902_v43  ;;  %v877_v43 = vmax.f32 %v845_v33, 0.0  ;;  %v893_v24 = vmin.f32 %v861_v42, 6.0 }
 0x11f   : > { %929 = vst [vmem:[%s1443_s25 + $0x90] sm:$0xff] %v884_v48  ;;  %930 = vst [vmem:[%s1443_s25 + $0x98] sm:$0xff] %v884_v48 }
 0x120   : > { %933 = vst [vmem:[%s1443_s25 + $0xb0] sm:$0xff] %v884_v48  ;;  %934 = vst [vmem:[%s1443_s25 + $0xb8] sm:$0xff] %v884_v48  ;;  %v828_v48 = vadd.f32 %v1424_v26, %v789_v40  ;;  %v909_v50 = vmin.f32 %v877_v43, 6.0 }
 0x121   : > { %993 = vst [vmem:[%s1443_s25 + $0x290] sm:$0xff] %v900_v49  ;;  %994 = vst [vmem:[%s1443_s25 + $0x298] sm:$0xff] %v900_v49 }
 0x122   : > { %997 = vst [vmem:[%s1443_s25 + $0x2b0] sm:$0xff] %v900_v49  ;;  %998 = vst [vmem:[%s1443_s25 + $0x2b8] sm:$0xff] %v900_v49  ;;  %v844_v49 = vadd.f32 %v1424_v26, %v805_v41  ;;  %v860_v55 = vmax.f32 %v828_v48, 0.0  ;;  %v894_v26 = vmin.f32 %v862_v51, 6.0 }
 0x123   : > { %951 = vst [vmem:[%s1443_s25 + $0x140] sm:$0xff] %v889_v8  ;;  %952 = vst [vmem:[%s1443_s25 + $0x148] sm:$0xff] %v889_v8 }
 0x124   : > { %955 = vst [vmem:[%s1443_s25 + $0x160] sm:$0xff] %v889_v8  ;;  %956 = vst [vmem:[%s1443_s25 + $0x168] sm:$0xff] %v889_v8  ;;  %v876_v56 = vmax.f32 %v844_v49, 0.0  ;;  %v892_v58 = vmin.f32 %v860_v55, 6.0 }
 0x125   : > { %1015 = vst [vmem:[%s1443_s25 + $0x340] sm:$0xff] %v905_v9  ;;  %1016 = vst [vmem:[%s1443_s25 + $0x348] sm:$0xff] %v905_v9 }
 0x126   : > { %1019 = vst [vmem:[%s1443_s25 + $0x360] sm:$0xff] %v905_v9  ;;  %1020 = vst [vmem:[%s1443_s25 + $0x368] sm:$0xff] %v905_v9  ;;  %v908_v59 = vmin.f32 %v876_v56, 6.0 }
 0x127   : > { %943 = vst [vmem:[%s1443_s25 + $0x100] sm:$0xff] %v887_v12  ;;  %944 = vst [vmem:[%s1443_s25 + $0x108] sm:$0xff] %v887_v12 }
 0x128   : > { %947 = vst [vmem:[%s1443_s25 + $0x120] sm:$0xff] %v887_v12  ;;  %948 = vst [vmem:[%s1443_s25 + $0x128] sm:$0xff] %v887_v12 }
 0x129   : > { %1007 = vst [vmem:[%s1443_s25 + $0x300] sm:$0xff] %v903_v13  ;;  %1008 = vst [vmem:[%s1443_s25 + $0x308] sm:$0xff] %v903_v13 }
 0x12a   : > { %1011 = vst [vmem:[%s1443_s25 + $0x320] sm:$0xff] %v903_v13  ;;  %1012 = vst [vmem:[%s1443_s25 + $0x328] sm:$0xff] %v903_v13 }
 0x12b   : > { %953 = vst [vmem:[%s1443_s25 + $0x150] sm:$0xff] %v890_v18  ;;  %954 = vst [vmem:[%s1443_s25 + $0x158] sm:$0xff] %v890_v18 }
 0x12c   : > { %957 = vst [vmem:[%s1443_s25 + $0x170] sm:$0xff] %v890_v18  ;;  %958 = vst [vmem:[%s1443_s25 + $0x178] sm:$0xff] %v890_v18 }
 0x12d   : > { %1017 = vst [vmem:[%s1443_s25 + $0x350] sm:$0xff] %v906_v19  ;;  %1018 = vst [vmem:[%s1443_s25 + $0x358] sm:$0xff] %v906_v19 }
 0x12e   : > { %1021 = vst [vmem:[%s1443_s25 + $0x370] sm:$0xff] %v906_v19  ;;  %1022 = vst [vmem:[%s1443_s25 + $0x378] sm:$0xff] %v906_v19 }
 0x12f   : > { %945 = vst [vmem:[%s1443_s25 + $0x110] sm:$0xff] %v888_v25  ;;  %946 = vst [vmem:[%s1443_s25 + $0x118] sm:$0xff] %v888_v25 }
 0x130   : > { %949 = vst [vmem:[%s1443_s25 + $0x130] sm:$0xff] %v888_v25  ;;  %950 = vst [vmem:[%s1443_s25 + $0x138] sm:$0xff] %v888_v25 }
 0x131   : > { %1009 = vst [vmem:[%s1443_s25 + $0x310] sm:$0xff] %v904_v27  ;;  %1010 = vst [vmem:[%s1443_s25 + $0x318] sm:$0xff] %v904_v27 }
 0x132   : > { %1013 = vst [vmem:[%s1443_s25 + $0x330] sm:$0xff] %v904_v27  ;;  %1014 = vst [vmem:[%s1443_s25 + $0x338] sm:$0xff] %v904_v27 }
 0x133   : > { %967 = vst [vmem:[%s1443_s25 + $0x1c0] sm:$0xff] %v893_v24  ;;  %968 = vst [vmem:[%s1443_s25 + $0x1c8] sm:$0xff] %v893_v24 }
 0x134   : > { %971 = vst [vmem:[%s1443_s25 + $0x1e0] sm:$0xff] %v893_v24  ;;  %972 = vst [vmem:[%s1443_s25 + $0x1e8] sm:$0xff] %v893_v24 }
 0x135   : > { %1031 = vst [vmem:[%s1443_s25 + $0x3c0] sm:$0xff] %v909_v50  ;;  %1032 = vst [vmem:[%s1443_s25 + $0x3c8] sm:$0xff] %v909_v50 }
 0x136   : > { %1035 = vst [vmem:[%s1443_s25 + $0x3e0] sm:$0xff] %v909_v50  ;;  %1036 = vst [vmem:[%s1443_s25 + $0x3e8] sm:$0xff] %v909_v50 }
 0x137   : > { %959 = vst [vmem:[%s1443_s25 + $0x180] sm:$0xff] %v891_v53  ;;  %960 = vst [vmem:[%s1443_s25 + $0x188] sm:$0xff] %v891_v53 }
 0x138   : > { %963 = vst [vmem:[%s1443_s25 + $0x1a0] sm:$0xff] %v891_v53  ;;  %964 = vst [vmem:[%s1443_s25 + $0x1a8] sm:$0xff] %v891_v53 }
 0x139   : > { %1023 = vst [vmem:[%s1443_s25 + $0x380] sm:$0xff] %v907_v54  ;;  %1024 = vst [vmem:[%s1443_s25 + $0x388] sm:$0xff] %v907_v54 }
 0x13a   : > { %1027 = vst [vmem:[%s1443_s25 + $0x3a0] sm:$0xff] %v907_v54  ;;  %1028 = vst [vmem:[%s1443_s25 + $0x3a8] sm:$0xff] %v907_v54 }
 0x13b   : > { %969 = vst [vmem:[%s1443_s25 + $0x1d0] sm:$0xff] %v894_v26  ;;  %970 = vst [vmem:[%s1443_s25 + $0x1d8] sm:$0xff] %v894_v26 }
 0x13c   : > { %973 = vst [vmem:[%s1443_s25 + $0x1f0] sm:$0xff] %v894_v26  ;;  %974 = vst [vmem:[%s1443_s25 + $0x1f8] sm:$0xff] %v894_v26 }
 0x13d   : > { %1033 = vst [vmem:[%s1443_s25 + $0x3d0] sm:$0xff] %v910_v57  ;;  %1034 = vst [vmem:[%s1443_s25 + $0x3d8] sm:$0xff] %v910_v57 }
 0x13e   : > { %1037 = vst [vmem:[%s1443_s25 + $0x3f0] sm:$0xff] %v910_v57  ;;  %1038 = vst [vmem:[%s1443_s25 + $0x3f8] sm:$0xff] %v910_v57 }
 0x13f   : > { %961 = vst [vmem:[%s1443_s25 + $0x190] sm:$0xff] %v892_v58  ;;  %962 = vst [vmem:[%s1443_s25 + $0x198] sm:$0xff] %v892_v58 }
 0x140   : > { %965 = vst [vmem:[%s1443_s25 + $0x1b0] sm:$0xff] %v892_v58  ;;  %966 = vst [vmem:[%s1443_s25 + $0x1b8] sm:$0xff] %v892_v58 }
 0x141   : > { %1025 = vst [vmem:[%s1443_s25 + $0x390] sm:$0xff] %v908_v59  ;;  %1026 = vst [vmem:[%s1443_s25 + $0x398] sm:$0xff] %v908_v59 }
 0x142   : > { %1029 = vst [vmem:[%s1443_s25 + $0x3b0] sm:$0xff] %v908_v59  ;;  %1030 = vst [vmem:[%s1443_s25 + $0x3b8] sm:$0xff] %v908_v59 }
 0x143 PF: > { %s14_s17 = sadd.s32 1, %s1322_s17   ;;  %s1637_s15 = smov %s1318_s16 }
 0x144   : > { %p11_p6 = scmp.ge.s32.totalorder %s14_s17, 4   ;;  %s1638_s16 = smov %s1640_s18 }
 0x146   :  { %13 = sbr.rel (!%p11_p6) target bundleno = 2 (0x2), region = 77 }

</bundles_post_ra>
